<compile_context>
chip_gen: v6e
topology: v6e:2x2x1
jax: 0.10.0
libtpu: 0.0.40
codegen_flags: <defaults>
</compile_context>

<pallas_src>
import math

import jax
import jax.numpy as jnp
from jax.experimental import pallas as pl
from jax.experimental.pallas import tpu as pltpu


def _round_up(x, m):
    return ((x + m - 1) // m) * m


# ----------------------------------------------------------------------------
# Fused MLP Pallas kernel
# ----------------------------------------------------------------------------
def _fused_reward_kernel(bel_ref, sta_ref, w1b_ref, w1s_ref, b1_ref,
                         w2_ref, b2_ref, w3_ref, b3_ref, o_ref):
    # Layer 1: cat(belief, state) @ W1 + b1, ReLU.
    # The concat is folded into a split-K pair of MXU dots (W1 split by rows),
    # f32 accumulation; inputs are cast to bf16 in-register (no wrapper cast).
    h = jnp.dot(bel_ref[...].astype(jnp.bfloat16), w1b_ref[...],
                preferred_element_type=jnp.float32)
    h = h + jnp.dot(sta_ref[...].astype(jnp.bfloat16), w1s_ref[...],
                    preferred_element_type=jnp.float32)
    h = jnp.maximum(h + b1_ref[...], 0.0)

    # Layer 2: h @ W2 + b2, ReLU.
    h = jnp.dot(h.astype(jnp.bfloat16), w2_ref[...],
                preferred_element_type=jnp.float32)
    h = jnp.maximum(h + b2_ref[...], 0.0)

    # Layer 3: single output unit -> VPU broadcast-multiply + XLU lane reduce
    # (different VLIW slots than the MXU work), writing a lane-1 column
    # instead of a 128-wide dummy slab.  Padded h columns are exactly 0
    # (zero-padded W2 cols / b2) and padded w3 entries are 0, so the reduce
    # is exact.
    r = jnp.sum(h * w3_ref[...], axis=-1, keepdims=True)
    o_ref[...] = r + b3_ref[...]


def reward_model_forward(belief, state, pp):
    """belief:[B,belief_size], state:[B,state_size]  ->  reward:[B]."""
    B = belief.shape[0]
    Db = belief.shape[1]                      # static under jit
    Ds = state.shape[1]
    Hp = pp["w2"].shape[0]                    # padded hidden width

    # M tiling: pad rows only to the f32 sublane multiple (8), cap tile at 256
    # (weights are resident; (256, Hp) f32 intermediate stays under the vreg
    # budget at Hp=128).  Large B => multiple "parallel" steps (v7x 2-TC).
    tm = min(256, _round_up(max(B, 1), 8))
    Mp = _round_up(max(B, 1), tm)
    if Mp != B:
        belief = jnp.pad(belief, ((0, Mp - B), (0, 0)))
        state = jnp.pad(state, ((0, Mp - B), (0, 0)))

    # Advisory cost so XLA's scheduler can overlap this tiny custom call.
    flops = 2 * Mp * Hp * (Db + Ds + Hp + 1)
    bytes_accessed = (4 * Mp * (Db + Ds)          # f32 inputs
                      + 2 * (Db + Ds) * Hp        # bf16 W1 (split)
                      + 2 * Hp * Hp               # bf16 W2
                      + 4 * (3 * Hp + 1)          # f32 b1, b2, w3, b3
                      + 4 * Mp)                   # f32 (Mp, 1) output

    out = pl.pallas_call(
        _fused_reward_kernel,
        out_shape=jax.ShapeDtypeStruct((Mp, 1), jnp.float32),
        grid=(Mp // tm,),
        in_specs=[
            pl.BlockSpec((tm, Db), lambda i: (i, 0)),   # belief tile
            pl.BlockSpec((tm, Ds), lambda i: (i, 0)),   # state tile
            pl.BlockSpec((Db, Hp), lambda i: (0, 0)),   # W1 rows for belief
            pl.BlockSpec((Ds, Hp), lambda i: (0, 0)),   # W1 rows for state
            pl.BlockSpec((1, Hp), lambda i: (0, 0)),    # b1
            pl.BlockSpec((Hp, Hp), lambda i: (0, 0)),   # W2
            pl.BlockSpec((1, Hp), lambda i: (0, 0)),    # b2
            pl.BlockSpec((1, Hp), lambda i: (0, 0)),    # w3 row vector (f32)
            pl.BlockSpec((1, 1), lambda i: (0, 0)),     # b3 scalar
        ],
        out_specs=pl.BlockSpec((tm, 1), lambda i: (i, 0)),
        compiler_params=pltpu.CompilerParams(
            dimension_semantics=("parallel",)),
        cost_estimate=pl.CostEstimate(flops=flops, transcendentals=0,
                                      bytes_accessed=bytes_accessed),
    )(belief, state, pp["w1b"], pp["w1s"], pp["b1"], pp["w2"], pp["b2"],
      pp["w3"], pp["b3"])

    # .squeeze(dim=1) == take the single real column of the (Mp, 1) output.
    return out[:B, 0]


# ----------------------------------------------------------------------------
# Parameters: torch-style init, then one-time split / pad / transpose / cast
# ----------------------------------------------------------------------------
def init_torch_linear(key, in_features, out_features):
    """nn.Linear default init: U(-1/sqrt(in), 1/sqrt(in)); w:[out,in], b:[out]."""
    kw, kb = jax.random.split(key)
    bound = 1.0 / math.sqrt(in_features)
    w = jax.random.uniform(kw, (out_features, in_features), jnp.float32,
                           -bound, bound)
    b = jax.random.uniform(kb, (out_features,), jnp.float32, -bound, bound)
    return w, b


def prepare_padded_params(raw, belief_size, state_size, hidden_size):
    """Split W1 by input rows, pad hidden dim to 128, transpose, bf16-cast.

    Padding is EXPLICIT zero-fill so padded lanes contribute exactly 0
    (never rely on implicit out-of-bounds padding -> NaN leakage).
    """
    Hp = _round_up(hidden_size, 128)
    # Note: on v6e/v7x with real-sized MLPs (>=128 dims), rounding to 256
    # better fills the 256x256 MXU; 128 is right for the demo / v5e.

    w1, b1 = raw["fc1"]          # (hidden, D), (hidden,)
    w2, b2 = raw["fc2"]          # (hidden, hidden), (hidden,)
    w3, b3 = raw["fc3"]          # (1, hidden), (1,)

    w1t = w1.T                   # (D, hidden)

    def pad_cols(m, rows):
        out = jnp.zeros((rows, Hp), jnp.float32)
        return out.at[:m.shape[0], :m.shape[1]].set(m)

    w1b = pad_cols(w1t[:belief_size], belief_size).astype(jnp.bfloat16)
    w1s = pad_cols(w1t[belief_size:], state_size).astype(jnp.bfloat16)
    w2p = pad_cols(w2.T, Hp).astype(jnp.bfloat16)
    b1p = jnp.zeros((1, Hp), jnp.float32).at[0, :hidden_size].set(b1)
    b2p = jnp.zeros((1, Hp), jnp.float32).at[0, :hidden_size].set(b2)
    w3p = jnp.zeros((1, Hp), jnp.float32).at[0, :hidden_size].set(w3[0])
    b3p = b3.reshape(1, 1).astype(jnp.float32)

    return dict(w1b=w1b, w1s=w1s, b1=b1p, w2=w2p, b2=b2p, w3=w3p, b3=b3p)


def reward_model_reference(belief, state, raw):
    """Pure-JAX f32 reference of the PyTorch forward (for correctness check)."""
    w1, b1 = raw["fc1"]
    w2, b2 = raw["fc2"]
    w3, b3 = raw["fc3"]
    x = jnp.concatenate([belief, state], axis=1)
    h = jax.nn.relu(x @ w1.T + b1)
    h = jax.nn.relu(h @ w2.T + b2)
    return (h @ w3.T + b3)[:, 0]


if __name__ == "__main__":
    key = jax.random.PRNGKey(0)
    k1, k2, k3, kb, ks = jax.random.split(key, 5)

    belief_size, state_size, hidden_size, batch = 32, 16, 32, 2

    raw = dict(
        fc1=init_torch_linear(k1, belief_size + state_size, hidden_size),
        fc2=init_torch_linear(k2, hidden_size, hidden_size),
        fc3=init_torch_linear(k3, hidden_size, 1),
    )
    pp = prepare_padded_params(raw, belief_size, state_size, hidden_size)

    belief = jax.random.normal(kb, (batch, belief_size), jnp.float32)
    state = jax.random.normal(ks, (batch, state_size), jnp.float32)

    fwd = jax.jit(reward_model_forward)
    out = jax.block_until_ready(fwd(belief, state, pp))
    ref = reward_model_reference(belief, state, raw)

    assert out.shape == (batch,), out.shape
    assert bool(jnp.all(jnp.isfinite(out)))
    # bf16 MXU operands with f32 accumulation -> loose tolerance vs f32 reference
    assert bool(jnp.allclose(out, ref, atol=5e-2, rtol=5e-2)), (out, ref)
    print("KERNEL_OK")
</pallas_src>

<mosaic_0001>
module attributes {stable_mosaic.version = 11 : i64} {
  func.func @_fused_reward_kernel(%arg0: i32, %arg1: memref<8x32xf32, #tpu.memory_space<vmem>>, %arg2: memref<8x16xf32, #tpu.memory_space<vmem>>, %arg3: memref<32x128xbf16, #tpu.memory_space<vmem>>, %arg4: memref<16x128xbf16, #tpu.memory_space<vmem>>, %arg5: memref<1x128xf32, #tpu.memory_space<vmem>>, %arg6: memref<128x128xbf16, #tpu.memory_space<vmem>>, %arg7: memref<1x128xf32, #tpu.memory_space<vmem>>, %arg8: memref<1x128xf32, #tpu.memory_space<vmem>>, %arg9: memref<1x1xf32, #tpu.memory_space<vmem>>, %arg10: memref<8x1xf32, #tpu.memory_space<vmem>>) attributes {dimension_semantics = [#tpu.dimension_semantics<parallel>], iteration_bounds = array<i64: 1>, scalar_prefetch = 0 : i64, scratch_operands = 0 : i64, tpu.core_type = #tpu.core_type<tc>, window_params = [{transform_indices = @transform_0, window_bounds = array<i64: 8, 32>}, {transform_indices = @transform_1, window_bounds = array<i64: 8, 16>}, {pipeline_mode = #tpu.pipeline_mode<synchronous>, transform_indices = @transform_2, window_bounds = array<i64: 32, 128>}, {pipeline_mode = #tpu.pipeline_mode<synchronous>, transform_indices = @transform_3, window_bounds = array<i64: 16, 128>}, {pipeline_mode = #tpu.pipeline_mode<synchronous>, transform_indices = @transform_4, window_bounds = array<i64: 1, 128>}, {pipeline_mode = #tpu.pipeline_mode<synchronous>, transform_indices = @transform_5, window_bounds = array<i64: 128, 128>}, {pipeline_mode = #tpu.pipeline_mode<synchronous>, transform_indices = @transform_6, window_bounds = array<i64: 1, 128>}, {pipeline_mode = #tpu.pipeline_mode<synchronous>, transform_indices = @transform_7, window_bounds = array<i64: 1, 128>}, {pipeline_mode = #tpu.pipeline_mode<synchronous>, transform_indices = @transform_8, window_bounds = array<i64: 1, 1>}, {transform_indices = @transform_9, window_bounds = array<i64: 8, 1>}]} {
    %c0 = arith.constant 0 : index
    %c0_0 = arith.constant 0 : index
    %0 = vector.load %arg1[%c0, %c0_0] : memref<8x32xf32, #tpu.memory_space<vmem>>, vector<8x32xf32>
    %1 = arith.truncf %0 : vector<8x32xf32> to vector<8x32xbf16>
    %c0_1 = arith.constant 0 : index
    %c0_2 = arith.constant 0 : index
    %2 = vector.load %arg3[%c0_1, %c0_2] : memref<32x128xbf16, #tpu.memory_space<vmem>>, vector<32x128xbf16>
    %cst = arith.constant dense<0.000000e+00> : vector<8x128xf32>
    %3 = tpu.matmul %1, %2, %cst {dimension_numbers = #tpu.dot_dimension_numbers<[1], [0], [0], [1], [0, 0, 1, 1], [], []>} : vector<8x32xbf16>, vector<32x128xbf16>, vector<8x128xf32> -> vector<8x128xf32>
    %c0_3 = arith.constant 0 : index
    %c0_4 = arith.constant 0 : index
    %4 = vector.load %arg2[%c0_3, %c0_4] : memref<8x16xf32, #tpu.memory_space<vmem>>, vector<8x16xf32>
    %5 = arith.truncf %4 : vector<8x16xf32> to vector<8x16xbf16>
    %c0_5 = arith.constant 0 : index
    %c0_6 = arith.constant 0 : index
    %6 = vector.load %arg4[%c0_5, %c0_6] : memref<16x128xbf16, #tpu.memory_space<vmem>>, vector<16x128xbf16>
    %cst_7 = arith.constant dense<0.000000e+00> : vector<8x128xf32>
    %7 = tpu.matmul %5, %6, %cst_7 {dimension_numbers = #tpu.dot_dimension_numbers<[1], [0], [0], [1], [0, 0, 1, 1], [], []>} : vector<8x16xbf16>, vector<16x128xbf16>, vector<8x128xf32> -> vector<8x128xf32>
    %8 = arith.addf %3, %7 : vector<8x128xf32>
    %c0_8 = arith.constant 0 : index
    %c0_9 = arith.constant 0 : index
    %9 = vector.load %arg5[%c0_8, %c0_9] : memref<1x128xf32, #tpu.memory_space<vmem>>, vector<1x128xf32>
    %10 = vector.broadcast %9 : vector<1x128xf32> to vector<8x128xf32>
    %11 = arith.addf %8, %10 : vector<8x128xf32>
    %cst_10 = arith.constant 0.000000e+00 : f32
    %12 = vector.broadcast %cst_10 : f32 to vector<8x128xf32>
    %13 = arith.maximumf %11, %12 : vector<8x128xf32>
    %14 = arith.truncf %13 : vector<8x128xf32> to vector<8x128xbf16>
    %c0_11 = arith.constant 0 : index
    %c0_12 = arith.constant 0 : index
    %15 = vector.load %arg6[%c0_11, %c0_12] : memref<128x128xbf16, #tpu.memory_space<vmem>>, vector<128x128xbf16>
    %cst_13 = arith.constant dense<0.000000e+00> : vector<8x128xf32>
    %16 = tpu.matmul %14, %15, %cst_13 {dimension_numbers = #tpu.dot_dimension_numbers<[1], [0], [0], [1], [0, 0, 1, 1], [], []>} : vector<8x128xbf16>, vector<128x128xbf16>, vector<8x128xf32> -> vector<8x128xf32>
    %c0_14 = arith.constant 0 : index
    %c0_15 = arith.constant 0 : index
    %17 = vector.load %arg7[%c0_14, %c0_15] : memref<1x128xf32, #tpu.memory_space<vmem>>, vector<1x128xf32>
    %18 = vector.broadcast %17 : vector<1x128xf32> to vector<8x128xf32>
    %19 = arith.addf %16, %18 : vector<8x128xf32>
    %cst_16 = arith.constant 0.000000e+00 : f32
    %20 = vector.broadcast %cst_16 : f32 to vector<8x128xf32>
    %21 = arith.maximumf %19, %20 : vector<8x128xf32>
    %c0_17 = arith.constant 0 : index
    %c0_18 = arith.constant 0 : index
    %22 = vector.load %arg8[%c0_17, %c0_18] : memref<1x128xf32, #tpu.memory_space<vmem>>, vector<1x128xf32>
    %23 = vector.broadcast %22 : vector<1x128xf32> to vector<8x128xf32>
    %24 = arith.mulf %21, %23 : vector<8x128xf32>
    %cst_19 = arith.constant dense<0.000000e+00> : vector<8xf32>
    %25 = vector.multi_reduction <add>, %24, %cst_19 [1] : vector<8x128xf32> to vector<8xf32>
    %26 = vector.shape_cast %25 : vector<8xf32> to vector<8x1xf32>
    %c0_20 = arith.constant 0 : index
    %c0_21 = arith.constant 0 : index
    %27 = vector.load %arg9[%c0_20, %c0_21] : memref<1x1xf32, #tpu.memory_space<vmem>>, vector<1x1xf32>
    %28 = vector.broadcast %27 : vector<1x1xf32> to vector<8x1xf32>
    %29 = arith.addf %26, %28 : vector<8x1xf32>
    %c0_22 = arith.constant 0 : index
    %c0_23 = arith.constant 0 : index
    %30 = vector.load %arg10[%c0_22, %c0_23] : memref<8x1xf32, #tpu.memory_space<vmem>>, vector<8x1xf32>
    tpu.vector_store %arg10[%c0_22, %c0_23], %29 {strides = array<i32>} : memref<8x1xf32, #tpu.memory_space<vmem>>, vector<8x1xf32>,
    return
  }
  func.func @transform_0(%arg0: i32) -> (i32, i32) {
    %c0_i32 = arith.constant 0 : i32
    %c0_i32_0 = arith.constant 0 : i32
    return %arg0, %c0_i32 : i32, i32
  }
  func.func @transform_1(%arg0: i32) -> (i32, i32) {
    %c0_i32 = arith.constant 0 : i32
    %c0_i32_0 = arith.constant 0 : i32
    return %arg0, %c0_i32 : i32, i32
  }
  func.func @transform_2(%arg0: i32) -> (i32, i32) {
    %c0_i32 = arith.constant 0 : i32
    %c0_i32_0 = arith.constant 0 : i32
    %c0_i32_1 = arith.constant 0 : i32
    return %c0_i32, %c0_i32_0 : i32, i32
  }
  func.func @transform_3(%arg0: i32) -> (i32, i32) {
    %c0_i32 = arith.constant 0 : i32
    %c0_i32_0 = arith.constant 0 : i32
    %c0_i32_1 = arith.constant 0 : i32
    return %c0_i32, %c0_i32_0 : i32, i32
  }
  func.func @transform_4(%arg0: i32) -> (i32, i32) {
    %c0_i32 = arith.constant 0 : i32
    %c0_i32_0 = arith.constant 0 : i32
    %c0_i32_1 = arith.constant 0 : i32
    return %c0_i32, %c0_i32_0 : i32, i32
  }
  func.func @transform_5(%arg0: i32) -> (i32, i32) {
    %c0_i32 = arith.constant 0 : i32
    %c0_i32_0 = arith.constant 0 : i32
    %c0_i32_1 = arith.constant 0 : i32
    return %c0_i32, %c0_i32_0 : i32, i32
  }
  func.func @transform_6(%arg0: i32) -> (i32, i32) {
    %c0_i32 = arith.constant 0 : i32
    %c0_i32_0 = arith.constant 0 : i32
    %c0_i32_1 = arith.constant 0 : i32
    return %c0_i32, %c0_i32_0 : i32, i32
  }
  func.func @transform_7(%arg0: i32) -> (i32, i32) {
    %c0_i32 = arith.constant 0 : i32
    %c0_i32_0 = arith.constant 0 : i32
    %c0_i32_1 = arith.constant 0 : i32
    return %c0_i32, %c0_i32_0 : i32, i32
  }
  func.func @transform_8(%arg0: i32) -> (i32, i32) {
    %c0_i32 = arith.constant 0 : i32
    %c0_i32_0 = arith.constant 0 : i32
    %c0_i32_1 = arith.constant 0 : i32
    return %c0_i32, %c0_i32_0 : i32, i32
  }
  func.func @transform_9(%arg0: i32) -> (i32, i32) {
    %c0_i32 = arith.constant 0 : i32
    %c0_i32_0 = arith.constant 0 : i32
    return %arg0, %c0_i32 : i32, i32
  }
}

</mosaic_0001>

<bundles_post_ra>
// kernel: reward_model_forward.1
= control target key start
LH: loop header
LB: loop body
LE: loop exit
PB: predicated region body
PF: predicated region fallthrough
CT: control target
= control target key end

     0   :  { %s503_s0 = inlined_call_operand.vmem [shape: f32[8,32], index: 0, kind: input, shape index: {}]   ;;  %s504_s1 = inlined_call_operand.vmem [shape: f32[8,16], index: 1, kind: input, shape index: {}]   ;;  %s505_s2 = inlined_call_operand.vmem [shape: bf16[32,128], index: 2, kind: input, shape index: {}]   ;;  %s506_s3 = inlined_call_operand.vmem [shape: bf16[16,128], index: 3, kind: input, shape index: {}]   ;;  %s507_s4 = inlined_call_operand.vmem [shape: f32[1,128], index: 4, kind: input, shape index: {}]   ;;  %s508_s5 = inlined_call_operand.hbm [shape: bf16[128,128], index: 5, kind: input, shape index: {}]   ;;  %s509_s6 = inlined_call_operand.vmem [shape: f32[1,128], index: 6, kind: input, shape index: {}]   ;;  %s510_s7 = inlined_call_operand.vmem [shape: f32[1,128], index: 7, kind: input, shape index: {}]   ;;  %s511_s8 = inlined_call_operand.<no memory space> [shape: f32[1,1], index: 8, kind: input, shape index: {}]   ;;  %s512_s9 = inlined_call_operand.vmem [shape: f32[8,1], index: 9, kind: output, shape index: {}]  }
   0x1   :  { %v14_v0 = vstv %s511_s8 }
   0x2   :  { %15 = vst [vmem:[#allocation2] sm:$0x1] %v14_v0 }
   0x3   :  { %16 = vsyncpa [#allocation4], 0  ;;  %s415_s11 = smov [#allocation3]  }
   0x4   :  { %s32_s12 = sshll.u32 %s415_s11, 4  ;;  %s33_s12 = int_to_ptr.vmem [resolvable:$true] %s32_s12 }
   0x5   :  { %s401_s13 = scalar_lea.vmem %s33_s12, 1024  ;;  %p406_p1 = scmp.lt.s32.totalorder %s33_s12, %s33_s12 }
   0x6   :  { %p402_p0 = scmp.ne.s32.totalorder %s33_s12, %s401_s13  ;;  %p407_p2 = scmp.lt.s32.totalorder %s401_s13, %s401_s13 }
   0x8   :  { %p408_p3 = por %p407_p2, %p406_p1 }
   0xa   :  { %p409_p4 = pnand %p408_p3, %p402_p0 }
   0xc   :  { %412 = shalt.err (!%p409_p4)
}
   0xd   :  { %s416_s14 = smov 64   ;;  %s417_s15 = smov 4  }
   0xe   :  { %38 = dma.hbm_to_vmem [thread:$0]  %s508_s5, 1024, %s33_s12, [#allocation4], %s416_s14, %s416_s14, %s417_s15  }
   0xf   :  { %413 = dma.done.wait [#allocation4], 1024  }
  0x10   :  { %414 = vsyncadd [#allocation4], 4294966272  ;;  %v418_v1 = vmov 0.0   ;;  %vm419_vm0 = vmmov 0   ;;  %v382_v2 = vld [vmem:[%s506_s3] sm:$0xff]   ;;  %vm65_vm1 = vcmask 130048  }
  0x11   :  { %343 = vmatprep.subr.bf16.mxu1 %v418_v1  ;;  %345 = vmatprep.mubr.msk.bf16.mxu1 %vm419_vm0, %v418_v1  ;;  %v55_v3 = vld [vmem:[%s504_s1] sm:$0xff]  ;;  %v383_v5 = vld [vmem:[%s505_s2 + $0x8] sm:$0xff]   ;;  %v386_v9 = vld [vmem:[#allocation3 + $0x30] sm:$0xff]   ;;  %vm121_vm2 = vcmask 261120   ;;  %vm305_vm3 = vcmask 7168  }
  0x12   :  { %357 = vmatprep.subr.bf16.mxu0 %v418_v1  ;;  %373 = vmatprep.mubr.msk.bf16.mxu0 %vm419_vm0, %v418_v1  ;;  %v56_v4 = vpack.c.bf16 %v55_v3, %v55_v3  ;;  %v385_v6 = vld [vmem:[#allocation3 + $0x38] sm:$0xff]   ;;  %v387_v11 = vld [vmem:[#allocation3 + $0x28] sm:$0xff]   ;;  %v388_v12 = vld [vmem:[#allocation3 + $0x20] sm:$0xff]  }
  0x13   :  { %344 = vmatpush3.bf16.msra.mxu1 %v382_v2  ;;  %v384_v7 = vld [vmem:[%s505_s2] sm:$0xff]   ;;  %358 = vmatpush3.bf16.msra.mxu0 %v385_v6  ;;  %v390_v14 = vld [vmem:[#allocation3 + $0x10] sm:$0xff]   ;;  %v391_v15 = vld [vmem:[#allocation3 + $0x8] sm:$0xff]  }
  0x14   :  { %349 = vmatprep.subr.bf16.mxu1 %v418_v1  ;;  %v49_v8 = vld [vmem:[%s503_s0] sm:$0xff]  ;;  %359 = vmatprep.subr.bf16.mxu0 %v418_v1 }
  0x15   :  { %v50_v10 = vpack.c.bf16 %v49_v8, %v49_v8  ;;  %v389_v13 = vld [vmem:[#allocation3 + $0x18] sm:$0xff]   ;;  %v392_v16 = vld [vmem:[#allocation3] sm:$0xff]  }
  0x16   :  { %346 = vmatmul.mubr.msk.bf16.vlgmr.msra.gmra.mxu1 %vm65_vm1, %v56_v4  ;;  %v317_v22 = vld [vmem:[%s507_s4] ss:$0 sm:$0xff] }
  0x17   :  { %350 = vmatpush3.bf16.msra.mxu1 %v383_v5  ;;  %353 = vmatprep.mubr.msk.bf16.mxu1 %vm419_vm0, %v418_v1  ;;  %v318_v30 = vld [vmem:[%s509_s6] ss:$0 sm:$0xff] }
  0x18   :  { %351 = vmatprep.subr.bf16.mxu1 %v418_v1  ;;  %360 = vmatpush3.bf16.msra.mxu0 %v386_v9  ;;  %v327_v34 = vld [vmem:[%s510_s7] ss:$0 sm:$0xff] }
  0x19   :  { %361 = vmatprep.subr.bf16.mxu0 %v418_v1  ;;  %v328_v39 = vld [vmem:[#allocation2] ss:$0 sm:$0xff] }
  0x1b   :  { %352 = vmatpush3.bf16.msra.mxu1 %v384_v7 }
  0x1c   :  { %362 = vmatpush3.bf16.msra.mxu0 %v387_v11 }
  0x1d   :  { %363 = vmatprep.subr.bf16.mxu0 %v418_v1 }
  0x1e   :  { %354 = vmatmul.mubr.msk.bf16.vlgmr.msra.gmra.mxu1 %vm121_vm2, %v50_v10 }
  0x20   :  { %364 = vmatpush3.bf16.msra.mxu0 %v388_v12 }
  0x21   :  { %365 = vmatprep.subr.bf16.mxu0 %v418_v1 }
  0x24   :  { %366 = vmatpush3.bf16.msra.mxu0 %v389_v13 }
  0x25   :  { %367 = vmatprep.subr.bf16.mxu0 %v418_v1 }
  0x28   :  { %368 = vmatpush3.bf16.msra.mxu0 %v390_v14 }
  0x29   :  { %369 = vmatprep.subr.bf16.mxu0 %v418_v1 }
  0x2c   :  { %370 = vmatpush3.bf16.msra.mxu0 %v391_v15 }
  0x2d   :  { %371 = vmatprep.subr.bf16.mxu0 %v418_v1 }
  0x30   :  { %372 = vmatpush3.bf16.msra.mxu0 %v392_v16 }
  0xd6   :  { %v103_v17 = vpop.f32.mrf.mxu1 }
  0xd8   :  { %v347_v18 = vpop.f32.mrf.mxu1 }
  0xda   :  { %v106_v19 = vpop.f32.mrf.mxu1 }
  0xdc   :  { %v348_v20 = vpop.f32.mrf.mxu1 }
  0xde   :  { %v159_v21 = vpop.f32.mrf.mxu1 }
  0xdf   :  { %v160_v23 = vadd.f32 %v159_v21, %v103_v17 }
  0xe0   :  { %v355_v24 = vpop.f32.mrf.mxu1 }
  0xe1   :  { %v172_v25 = vadd.f32 %v317_v22, %v160_v23 }
  0xe2   :  { %v162_v26 = vpop.f32.mrf.mxu1 }
  0xe3   :  { %v173_v27 = vmax.f32 %v172_v25, 0.0 }
  0xe4   :  { %v356_v28 = vpop.f32.mrf.mxu1 }
  0xe5   :  { %v174_v29 = vpack.c.bf16 %v173_v27, %v173_v27 }
  0xe7   :  { %374 = vmatmul.mubr.bf16.vlgmr.msra.gmra.mxu0 %v174_v29 }
 0x1a7   :  { %v280_v31 = vpop.f32.mrf.mxu0 }
 0x1a8   :  { %v281_v32 = vadd.f32 %v318_v30, %v280_v31 }
 0x1a9   :  { %v375_v33 = vpop.f32.mrf.mxu0 }
 0x1aa   :  { %v286_v35 = vmax.f32 %v281_v32, 0.0 }
 0x1ab   :  { %v283_v36 = vpop.f32.mrf.mxu0 }
 0x1ac   :  { %v294_v37 = vmul.f32 %v327_v34, %v286_v35 }
 0x1ad   :  { %v376_v38 = vpop.f32.mrf.mxu0 }
 0x1ae   :  { %295 = vadd.xlane.f32.xlu0 %v294_v37 }
 0x237   :  { %v296_v40 = vpop.xlane.xlu0 %295 }
 0x238   :  { %v304_v41 = vadd.f32 %v328_v39, %v296_v40 }
 0x23a   :  { %306 = vst.msk [vmem:[%s512_s9] sm:$0xff] %vm305_vm3, %v304_v41 }
 0x23b   :  { %311 = vsyncpa [#allocation4], 1 }

</bundles_post_ra>
